<compile_context>
chip_gen: v6e
topology: v6e:2x2x1
jax: 0.10.0
libtpu: 0.0.40
codegen_flags: <defaults>
</compile_context>

<pallas_src>
import functools

import jax
import jax.numpy as jnp
from jax.experimental import pallas as pl
from jax.experimental.pallas import tpu as pltpu


_TILE_BYTES = 2 * 1024 * 1024      # target per-input-tile size (HBM roofline by ~512 rows)
_MAX_BLOCK_ROWS = 512
_MIN_GRID_STEPS = 8                # keep enough steps for v7x megacore + pipelining


def _rmsnorm_kernel(x_ref, w_ref, o_ref, *, eps: float):
    """Plain path: each kernel row is one logical row (reduce whole lane axis)."""
    xf = x_ref[...].astype(jnp.float32)
    ms = jnp.mean(xf * xf, axis=-1, keepdims=True)       # (tm, 1)
    inv = jax.lax.rsqrt(ms + eps)
    o_ref[...] = (xf * inv * w_ref[...]).astype(o_ref.dtype)


def _rmsnorm_folded_kernel(x_ref, w_ref, a_ref, o_ref, *, eps: float):
    """Folded path: `fold` logical rows share one 128-lane kernel row.

    The per-segment mean (broadcast back to every lane of its segment) is
    computed as (x*x) @ A where A is a block-diagonal matrix with 1/dim in
    each dim x dim block.  The MXU is idle in this kernel, so this is free;
    it also avoids in-kernel lane reshapes.
    """
    xf = x_ref[...].astype(jnp.float32)                   # (tm, fold*dim)
    ms = jnp.dot(
        xf * xf,
        a_ref[...],
        precision=jax.lax.Precision.HIGHEST,
        preferred_element_type=jnp.float32,
    )                                                     # (tm, fold*dim), segment means
    inv = jax.lax.rsqrt(ms + eps)
    o_ref[...] = (xf * inv * w_ref[...]).astype(o_ref.dtype)


def _choose_block_rows(work_rows: int, width: int, itemsize: int) -> int:
    """Pick a sublane-aligned row tile: ~2 MiB, <=512 rows, grid >= ~8 steps."""
    row_align = max(8, 32 // max(1, itemsize))            # 8 for f32, 16 for bf16
    if work_rows <= row_align:
        # Block equals the full row extent (valid even if < 8 rows).
        return work_rows
    per_row = max(1, width * itemsize)
    tm = (_TILE_BYTES // per_row) // row_align * row_align
    tm = max(row_align, min(tm, _MAX_BLOCK_ROWS))
    # Keep the grid long enough to feed both v7x TensorCores / the pipeline.
    cap = max(row_align, (work_rows // _MIN_GRID_STEPS) // row_align * row_align)
    return min(tm, cap)


def rms_norm(x: jax.Array, weight: jax.Array, eps: float):
    """Pallas RMSNorm over the last axis of x (flash_attn rms_norm semantics)."""
    orig_shape = x.shape
    dim = orig_shape[-1]
    assert weight.shape == (dim,), f"weight shape {weight.shape} != ({dim},)"

    x2d = x.reshape(-1, dim)
    n_rows = x2d.shape[0]
    if n_rows == 0:
        return x

    # Lane-folding factor: pack `fold` rows into one 128-lane kernel row when
    # dim is a divisor of 128 and the row count permits (free metadata reshape
    # of a contiguous row-major array).
    fold = 128 // dim if (dim < 128 and 128 % dim == 0) else 1
    while fold > 1 and n_rows % fold != 0:
        fold //= 2

    width = fold * dim
    work_rows = n_rows // fold
    x_work = x2d.reshape(work_rows, width)

    itemsize = jnp.dtype(x.dtype).itemsize
    tm = _choose_block_rows(work_rows, width, itemsize)
    grid_rows = pl.cdiv(work_rows, tm)

    # Hoisted once: f32 weight (tiled across folded segments).
    w_f32 = weight.astype(jnp.float32)
    w_work = (jnp.tile(w_f32, fold) if fold > 1 else w_f32).reshape(1, width)

    compiler_params = pltpu.CompilerParams(dimension_semantics=("parallel",))
    out_shape = jax.ShapeDtypeStruct((work_rows, width), x.dtype)
    x_spec = pl.BlockSpec((tm, width), lambda i: (i, 0))
    w_spec = pl.BlockSpec((1, width), lambda i: (0, 0))
    o_spec = pl.BlockSpec((tm, width), lambda i: (i, 0))

    if fold > 1:
        # Block-diagonal averaging matrix: A[l', l] = 1/dim if same segment.
        seg = jnp.arange(width, dtype=jnp.int32) // dim
        a_mat = (seg[:, None] == seg[None, :]).astype(jnp.float32) / float(dim)
        out = pl.pallas_call(
            functools.partial(_rmsnorm_folded_kernel, eps=eps),
            out_shape=out_shape,
            grid=(grid_rows,),
            in_specs=[
                x_spec,
                w_spec,
                pl.BlockSpec((width, width), lambda i: (0, 0)),   # A (resident)
            ],
            out_specs=o_spec,
            compiler_params=compiler_params,
        )(x_work, w_work, a_mat)
    else:
        out = pl.pallas_call(
            functools.partial(_rmsnorm_kernel, eps=eps),
            out_shape=out_shape,
            grid=(grid_rows,),
            in_specs=[x_spec, w_spec],
            out_specs=o_spec,
            compiler_params=compiler_params,
        )(x_work, w_work)

    return out.reshape(orig_shape)


def rms_norm_ref(x, weight, eps):
    xf = x.astype(jnp.float32)
    ms = jnp.mean(xf * xf, axis=-1, keepdims=True)
    y = xf * jax.lax.rsqrt(ms + eps) * weight.astype(jnp.float32)
    return y.astype(x.dtype)


if __name__ == "__main__":
    key = jax.random.PRNGKey(0)
    eps = 1e-6

    # Module-consistent small shape: (batch, seq, hidden) with hidden = dim.
    batch, seq, hidden = 2, 8, 32
    k0, k1, k2, k3 = jax.random.split(key, 4)
    x = jax.random.normal(k0, (batch, seq, hidden), dtype=jnp.float32)
    # Module __init__: weight = ones(dim).  Perturb deterministically so the
    # weight multiply is actually exercised.
    weight = jnp.ones((hidden,), dtype=jnp.float32) + 0.01 * jnp.arange(
        hidden, dtype=jnp.float32
    )

    # 1) small dim (lane-folded path).
    y = rms_norm(x, weight, eps)
    jax.block_until_ready(y)
    assert y.shape == x.shape and y.dtype == x.dtype
    assert jnp.allclose(y, rms_norm_ref(x, weight, eps), atol=1e-5, rtol=1e-5)

    # 2) ragged row count (row count not a multiple of fold / tile).
    x2 = jax.random.normal(k1, (3, 5, hidden), dtype=jnp.float32)
    y2 = rms_norm(x2, weight, eps)
    jax.block_until_ready(y2)
    assert jnp.allclose(y2, rms_norm_ref(x2, weight, eps), atol=1e-5, rtol=1e-5)

    # 3) lane-dense dim (multiple of 128) on the plain path.
    hidden3 = 256
    x3 = jax.random.normal(k2, (2, 8, hidden3), dtype=jnp.float32)
    w3 = jnp.ones((hidden3,), dtype=jnp.float32) + 0.001 * jnp.arange(
        hidden3, dtype=jnp.float32
    )
    y3 = rms_norm(x3, w3, eps)
    jax.block_until_ready(y3)
    assert jnp.allclose(y3, rms_norm_ref(x3, w3, eps), atol=1e-5, rtol=1e-5)

    # 4) bf16 input: f32 reduction, cast back to bf16.
    x4 = jax.random.normal(k3, (2, 16, 128), dtype=jnp.bfloat16)
    w4 = jnp.ones((128,), dtype=jnp.float32)
    y4 = rms_norm(x4, w4, eps)
    jax.block_until_ready(y4)
    assert y4.dtype == jnp.bfloat16
    assert jnp.allclose(
        y4.astype(jnp.float32),
        rms_norm_ref(x4, w4, eps).astype(jnp.float32),
        atol=2e-2, rtol=2e-2,
    )

    print("KERNEL_OK")
</pallas_src>

<mosaic_0001>
module attributes {stable_mosaic.version = 11 : i64} {
  func.func @_rmsnorm_folded_kernel(%arg0: i32, %arg1: memref<4x128xf32, #tpu.memory_space<vmem>>, %arg2: memref<1x128xf32, #tpu.memory_space<vmem>>, %arg3: memref<128x128xf32, #tpu.memory_space<vmem>>, %arg4: memref<4x128xf32, #tpu.memory_space<vmem>>) attributes {dimension_semantics = [#tpu.dimension_semantics<parallel>], iteration_bounds = array<i64: 1>, scalar_prefetch = 0 : i64, scratch_operands = 0 : i64, tpu.core_type = #tpu.core_type<tc>, window_params = [{transform_indices = @transform_0, window_bounds = array<i64: 4, 128>}, {pipeline_mode = #tpu.pipeline_mode<synchronous>, transform_indices = @transform_1, window_bounds = array<i64: 1, 128>}, {pipeline_mode = #tpu.pipeline_mode<synchronous>, transform_indices = @transform_2, window_bounds = array<i64: 128, 128>}, {transform_indices = @transform_3, window_bounds = array<i64: 4, 128>}]} {
    %c0 = arith.constant 0 : index
    %c0_0 = arith.constant 0 : index
    %0 = vector.load %arg1[%c0, %c0_0] : memref<4x128xf32, #tpu.memory_space<vmem>>, vector<4x128xf32>
    %1 = arith.mulf %0, %0 : vector<4x128xf32>
    %c0_1 = arith.constant 0 : index
    %c0_2 = arith.constant 0 : index
    %2 = vector.load %arg3[%c0_1, %c0_2] : memref<128x128xf32, #tpu.memory_space<vmem>>, vector<128x128xf32>
    %cst = arith.constant dense<0.000000e+00> : vector<4x128xf32>
    %3 = tpu.matmul %1, %2, %cst {dimension_numbers = #tpu.dot_dimension_numbers<[1], [0], [0], [1], [0, 0, 1, 1], [], []>, precision = #tpu.contract_precision<fp32>} : vector<4x128xf32>, vector<128x128xf32>, vector<4x128xf32> -> vector<4x128xf32>
    %cst_3 = arith.constant 9.99999997E-7 : f32
    %4 = vector.broadcast %cst_3 : f32 to vector<4x128xf32>
    %5 = arith.addf %3, %4 : vector<4x128xf32>
    %6 = math.rsqrt %5 : vector<4x128xf32>
    %7 = arith.mulf %0, %6 : vector<4x128xf32>
    %c0_4 = arith.constant 0 : index
    %c0_5 = arith.constant 0 : index
    %8 = vector.load %arg2[%c0_4, %c0_5] : memref<1x128xf32, #tpu.memory_space<vmem>>, vector<1x128xf32>
    %9 = vector.broadcast %8 : vector<1x128xf32> to vector<4x128xf32>
    %10 = arith.mulf %7, %9 : vector<4x128xf32>
    %c0_6 = arith.constant 0 : index
    %c0_7 = arith.constant 0 : index
    %11 = vector.load %arg4[%c0_6, %c0_7] : memref<4x128xf32, #tpu.memory_space<vmem>>, vector<4x128xf32>
    tpu.vector_store %arg4[%c0_6, %c0_7], %10 {strides = array<i32>} : memref<4x128xf32, #tpu.memory_space<vmem>>, vector<4x128xf32>,
    return
  }
  func.func @transform_0(%arg0: i32) -> (i32, i32) {
    %c0_i32 = arith.constant 0 : i32
    %c0_i32_0 = arith.constant 0 : i32
    return %arg0, %c0_i32 : i32, i32
  }
  func.func @transform_1(%arg0: i32) -> (i32, i32) {
    %c0_i32 = arith.constant 0 : i32
    %c0_i32_0 = arith.constant 0 : i32
    %c0_i32_1 = arith.constant 0 : i32
    return %c0_i32, %c0_i32_0 : i32, i32
  }
  func.func @transform_2(%arg0: i32) -> (i32, i32) {
    %c0_i32 = arith.constant 0 : i32
    %c0_i32_0 = arith.constant 0 : i32
    %c0_i32_1 = arith.constant 0 : i32
    return %c0_i32, %c0_i32_0 : i32, i32
  }
  func.func @transform_3(%arg0: i32) -> (i32, i32) {
    %c0_i32 = arith.constant 0 : i32
    %c0_i32_0 = arith.constant 0 : i32
    return %arg0, %c0_i32 : i32, i32
  }
}

</mosaic_0001>

<bundles_post_ra>
// kernel: tpu_custom_call.1
= control target key start
LH: loop header
LB: loop body
LE: loop exit
PB: predicated region body
PF: predicated region fallthrough
CT: control target
= control target key end

     0   :  { %8 = vsyncpa [#allocation3], 0  ;;  %s1522_s0 = inlined_call_operand.hbm [shape: f32[4,128], index: 0, kind: input, shape index: {}]   ;;  %s1523_s1 = inlined_call_operand.vmem [shape: f32[1,128], index: 1, kind: input, shape index: {}]   ;;  %s1524_s2 = inlined_call_operand.hbm [shape: f32[128,128], index: 2, kind: input, shape index: {}]   ;;  %s1525_s3 = inlined_call_operand.hbm [shape: f32[4,128], index: 3, kind: output, shape index: {}]  }
   0x1   :  { %9 = vsyncpa [#allocation6], 0 }
   0x2   :  { %10 = vsyncpa [#allocation4], 0  ;;  %s1115_s12 = smov [#allocation2]   ;;  %s1116_s14 = smov [#allocation5]  }
   0x3   :  { %s17_s13 = sshll.u32 %s1115_s12, 4  ;;  %s28_s15 = sshll.u32 %s1116_s14, 4  ;;  %s18_s13 = int_to_ptr.vmem [resolvable:$true] %s17_s13  ;;  %s29_s15 = int_to_ptr.vmem [resolvable:$true] %s28_s15 }
   0x4   :  { %s1057_s16 = scalar_lea.vmem %s18_s13, 64  ;;  %p1062_p1 = scmp.lt.s32.totalorder %s18_s13, %s18_s13 }
   0x5   :  { %p1058_p0 = scmp.ne.s32.totalorder %s18_s13, %s1057_s16  ;;  %p1063_p2 = scmp.lt.s32.totalorder %s1057_s16, %s1057_s16 }
   0x7   :  { %p1064_p3 = por %p1063_p2, %p1062_p1 }
   0x9   :  { %p1065_p4 = pnand %p1064_p3, %p1058_p0 }
   0xb   :  { %1068 = shalt.err (!%p1065_p4)
}
   0xc   :  { %20 = dma.hbm_to_vmem [thread:$0]  %s1522_s0, 64, %s18_s13, [#allocation3]  }
   0xd   :  { %s1077_s19 = scalar_lea.vmem %s29_s15, 2048  ;;  %p1082_p6 = scmp.lt.s32.totalorder %s29_s15, %s29_s15 }
   0xe   :  { %p1078_p5 = scmp.ne.s32.totalorder %s29_s15, %s1077_s19  ;;  %p1083_p7 = scmp.lt.s32.totalorder %s1077_s19, %s1077_s19 }
  0x10   :  { %p1084_p8 = por %p1083_p7, %p1082_p6 }
  0x12   :  { %p1085_p9 = pnand %p1084_p8, %p1078_p5 }
  0x14   :  { %1088 = shalt.err (!%p1085_p9)
}
  0x15   :  { %s1117_s20 = smov 128   ;;  %s1118_s21 = smov 8  }
  0x16   :  { %34 = dma.hbm_to_vmem [thread:$0]  %s1524_s2, 2048, %s29_s15, [#allocation6], %s1117_s20, %s1117_s20, %s1118_s21  }
  0x17   :  { %1109 = dma.done.wait [#allocation3], 64  }
  0x18   :  { %1110 = vsyncadd [#allocation3], 4294967232 }
  0x19   :  { %1111 = dma.done.wait [#allocation6], 2048  }
  0x1a   :  { %1112 = vsyncadd [#allocation6], 4294965248  ;;  %v1119_v0 = vmov 0.0   ;;  %vm1120_vm0 = vmmov 0   ;;  %v58_v1 = vld [vmem:[#allocation5 + $0x78] sm:$0xff]  ;;  %v57_v2 = vld [vmem:[#allocation5 + $0x70] sm:$0xff] }
  0x1b   :  { %830 = vmatprep.subr.mxu0 %v1119_v0  ;;  %865 = vmatprep.subr.mxu1 %v1119_v0  ;;  %v56_v3 = vld [vmem:[#allocation5 + $0x68] sm:$0xff]  ;;  %v1154_v4 = vand.u32 4294901760, %v58_v1  ;;  %v1156_v5 = vand.u32 4294901760, %v57_v2  ;;  %v55_v7 = vld [vmem:[#allocation5 + $0x60] sm:$0xff]  ;;  %v54_v8 = vld [vmem:[#allocation5 + $0x58] sm:$0xff]  ;;  %s1121_s24 = smov [#allocation7]  }
  0x1c   :  { %862 = vmatprep.mubr.msk.f32.mxu0 %vm1120_vm0, %v1119_v0  ;;  %897 = vmatprep.mubr.msk.f32.mxu1 %vm1120_vm0, %v1119_v0  ;;  %v1158_v6 = vand.u32 4294901760, %v56_v3  ;;  %v53_v9 = vld [vmem:[#allocation5 + $0x50] sm:$0xff]  ;;  %v1160_v10 = vand.u32 4294901760, %v55_v7  ;;  %v1162_v11 = vand.u32 4294901760, %v54_v8  ;;  %v52_v13 = vld [vmem:[#allocation5 + $0x48] sm:$0xff]  ;;  %v51_v14 = vld [vmem:[#allocation5 + $0x40] sm:$0xff] }
  0x1d   :  { %v1164_v12 = vand.u32 4294901760, %v53_v9  ;;  %831 = vmatpush3.msra.mxu0 %v1154_v4  ;;  %v1168_v15 = vsub.f32 %v58_v1, %v1154_v4  ;;  %v1171_v16 = vsub.f32 %v57_v2, %v1156_v5  ;;  %v1173_v17 = vand.u32 4294901760, %v52_v13  ;;  %v50_v19 = vld [vmem:[#allocation5 + $0x38] sm:$0xff]  ;;  %v49_v26 = vld [vmem:[#allocation5 + $0x30] sm:$0xff]  ;;  %v48_v34 = vld [vmem:[#allocation5 + $0x28] sm:$0xff]  ;;  %s717_s25 = sshll.u32 %s1121_s24, 4  ;;  %s718_s25 = int_to_ptr.vmem [resolvable:$true] %s717_s25 }
  0x1e   :  { %v1176_v18 = vsub.f32 %v56_v3, %v1158_v6  ;;  %832 = vmatprep.subr.mxu0 %v1119_v0  ;;  %v1180_v20 = vsub.f32 %v55_v7, %v1160_v10  ;;  %v1183_v21 = vsub.f32 %v54_v8, %v1162_v11  ;;  %v1189_v25 = vand.u32 4294901760, %v51_v14  ;;  %v47_v41 = vld [vmem:[#allocation5 + $0x20] sm:$0xff]  ;;  %v1234_v48 = vld [vmem:[#allocation2] sm:$0xf]  ;;  %v45_v54 = vld [vmem:[#allocation5 + $0x10] sm:$0xff]  ;;  %s1089_s26 = scalar_lea.vmem %s718_s25, 64  ;;  %p1094_p11 = scmp.lt.s32.totalorder %s718_s25, %s718_s25 }
  0x1f   :  { %833 = vmatpush3.msra.mxu0 %v1156_v5  ;;  %v153_v22 = vand.u32 4294901760, %v1168_v15  ;;  %v160_v23 = vand.u32 4294901760, %v1171_v16  ;;  %v1193_v28 = vand.u32 4294901760, %v50_v19  ;;  %v1197_v30 = vsub.f32 %v53_v9, %v1164_v12  ;;  %v46_v50 = vld [vmem:[#allocation5 + $0x18] sm:$0xff]  ;;  %v44_v61 = vld [vmem:[#allocation5 + $0x8] sm:$0xff]  ;;  %v43_v8 = vld [vmem:[#allocation5] sm:$0xff]  ;;  %p1090_p10 = scmp.ne.s32.totalorder %s718_s25, %s1089_s26  ;;  %p1095_p12 = scmp.lt.s32.totalorder %s1089_s26, %s1089_s26 }
  0x20   :  { %v167_v24 = vand.u32 4294901760, %v1176_v18  ;;  %834 = vmatprep.subr.mxu0 %v1119_v0  ;;  %v174_v27 = vand.u32 4294901760, %v1180_v20  ;;  %v181_v29 = vand.u32 4294901760, %v1183_v21  ;;  %v1210_v35 = vsub.f32 %v52_v13, %v1173_v17 }
  0x21   :  { %835 = vmatpush3.msra.mxu0 %v1158_v6  ;;  %v154_v31 = vsub.f32 %v1168_v15, %v153_v22  ;;  %v161_v32 = vsub.f32 %v1171_v16, %v160_v23  ;;  %v1213_v36 = vand.u32 4294901760, %v49_v26  ;;  %v188_v40 = vand.u32 4294901760, %v1197_v30  ;;  %p1096_p13 = por %p1095_p12, %p1094_p11 }
  0x22   :  { %v168_v33 = vsub.f32 %v1176_v18, %v167_v24  ;;  %836 = vmatprep.subr.mxu0 %v1119_v0  ;;  %v175_v39 = vsub.f32 %v1180_v20, %v174_v27  ;;  %v1221_v42 = vand.u32 4294901760, %v48_v34  ;;  %v1224_v43 = vsub.f32 %v51_v14, %v1189_v25 }
  0x23   :  { %837 = vmatpush3.msra.mxu0 %v1160_v10  ;;  %v155_v37 = vand.u32 4294901760, %v154_v31  ;;  %v162_v38 = vand.u32 4294901760, %v161_v32  ;;  %v182_v45 = vsub.f32 %v1183_v21, %v181_v29  ;;  %v195_v46 = vand.u32 4294901760, %v1210_v35  ;;  %p1097_p0 = pnand %p1096_p13, %p1090_p10 }
  0x24   :  { %838 = vmatprep.subr.mxu0 %v1119_v0  ;;  %v169_v44 = vand.u32 4294901760, %v168_v33  ;;  %v1232_v47 = vsub.f32 %v50_v19, %v1193_v28  ;;  %v1238_v49 = vand.u32 4294901760, %v47_v41  ;;  %v176_v51 = vand.u32 4294901760, %v175_v39 }
  0x25   :  { %839 = vmatpush3.msra.mxu0 %v1162_v11  ;;  %866 = vmatpush3.msra.mxu1 %v155_v37  ;;  %v189_v52 = vsub.f32 %v1197_v30, %v188_v40  ;;  %v202_v53 = vand.u32 4294901760, %v1224_v43  ;;  %v1246_v55 = vsub.f32 %v49_v26, %v1213_v36  ;;  %v42_v57 = vmul.f32 %v1234_v48, %v1234_v48 }
  0x26   :  { %840 = vmatprep.subr.mxu0 %v1119_v0  ;;  %867 = vmatprep.subr.mxu1 %v1119_v0  ;;  %v209_v56 = vand.u32 4294901760, %v1232_v47  ;;  %v183_v58 = vand.u32 4294901760, %v182_v45  ;;  %v196_v59 = vsub.f32 %v1210_v35, %v195_v46  ;;  %v1257_v60 = vand.u32 4294901760, %v46_v50 }
  0x27   :  { %841 = vmatpush3.msra.mxu0 %v1164_v12  ;;  %868 = vmatpush3.msra.mxu1 %v162_v38  ;;  %v1260_v62 = vsub.f32 %v48_v34, %v1221_v42  ;;  %v1264_v63 = vand.u32 4294901760, %v45_v54  ;;  %v1266_v1 = vand.u32 4294901760, %v42_v57  ;;  %v190_v2 = vand.u32 4294901760, %v189_v52 }
  0x28   :  { %842 = vmatprep.subr.mxu0 %v1119_v0  ;;  %869 = vmatprep.subr.mxu1 %v1119_v0  ;;  %v203_v3 = vsub.f32 %v1224_v43, %v202_v53  ;;  %v216_v7 = vand.u32 4294901760, %v1246_v55  ;;  %v1274_v9 = vsub.f32 %v47_v41, %v1238_v49  ;;  %v210_v13 = vsub.f32 %v1232_v47, %v209_v56 }
  0x29   :  { %843 = vmatpush3.msra.mxu0 %v1173_v17  ;;  %870 = vmatpush3.msra.mxu1 %v169_v44  ;;  %v1281_v14 = vand.u32 4294901760, %v44_v61  ;;  %v197_v19 = vand.u32 4294901760, %v196_v59  ;;  %v223_v26 = vand.u32 4294901760, %v1260_v62  ;;  %v1286_v31 = vsub.f32 %v42_v57, %v1266_v1 }
  0x2a   :  { %844 = vmatprep.subr.mxu0 %v1119_v0  ;;  %871 = vmatprep.subr.mxu1 %v1119_v0  ;;  %v1289_v32 = vsub.f32 %v46_v50, %v1257_v60  ;;  %v1293_v33 = vand.u32 4294901760, %v43_v8  ;;  %v204_v34 = vand.u32 4294901760, %v203_v3  ;;  %v217_v37 = vsub.f32 %v1246_v55, %v216_v7 }
  0x2b   :  { %845 = vmatpush3.msra.mxu0 %v1189_v25  ;;  %872 = vmatpush3.msra.mxu1 %v176_v51  ;;  %v230_v38 = vand.u32 4294901760, %v1274_v9  ;;  %v1301_v39 = vsub.f32 %v45_v54, %v1264_v63  ;;  %v211_v41 = vand.u32 4294901760, %v210_v13  ;;  %v224_v44 = vsub.f32 %v1260_v62, %v223_v26 }
  0x2c   :  { %846 = vmatprep.subr.mxu0 %v1119_v0  ;;  %873 = vmatprep.subr.mxu1 %v1119_v0  ;;  %v142_v45 = vand.u32 4294901760, %v1286_v31  ;;  %v237_v50 = vand.u32 4294901760, %v1289_v32  ;;  %v1312_v51 = vsub.f32 %v44_v61, %v1281_v14  ;;  %v218_v52 = vand.u32 4294901760, %v217_v37 }
  0x2d   :  { %847 = vmatpush3.msra.mxu0 %v1193_v28  ;;  %874 = vmatpush3.msra.mxu1 %v183_v58  ;;  %v231_v54 = vsub.f32 %v1274_v9, %v230_v38  ;;  %v244_v57 = vand.u32 4294901760, %v1301_v39  ;;  %v1322_v58 = vsub.f32 %v43_v8, %v1293_v33  ;;  %v225_v59 = vand.u32 4294901760, %v224_v44 }
  0x2e   :  { %848 = vmatprep.subr.mxu0 %v1119_v0  ;;  %875 = vmatprep.subr.mxu1 %v1119_v0  ;;  %v143_v61 = vsub.f32 %v1286_v31, %v142_v45  ;;  %v251_v3 = vand.u32 4294901760, %v1312_v51 }
  0x2f   :  { %849 = vmatpush3.msra.mxu0 %v1213_v36  ;;  %876 = vmatpush3.msra.mxu1 %v190_v2  ;;  %v238_v2 = vsub.f32 %v1289_v32, %v237_v50  ;;  %v232_v8 = vand.u32 4294901760, %v231_v54  ;;  %v245_v13 = vsub.f32 %v1301_v39, %v244_v57 }
  0x30   :  { %850 = vmatprep.subr.mxu0 %v1119_v0  ;;  %877 = vmatprep.subr.mxu1 %v1119_v0 }
  0x31   :  { %851 = vmatpush3.msra.mxu0 %v1221_v42  ;;  %878 = vmatpush3.msra.mxu1 %v197_v19  ;;  %v258_v19 = vand.u32 4294901760, %v1322_v58  ;;  %v239_v37 = vand.u32 4294901760, %v238_v2  ;;  %v246_v44 = vand.u32 4294901760, %v245_v13 }
  0x32   :  { %852 = vmatprep.subr.mxu0 %v1119_v0  ;;  %879 = vmatprep.subr.mxu1 %v1119_v0 }
  0x33   :  { %853 = vmatpush3.msra.mxu0 %v1238_v49  ;;  %880 = vmatpush3.msra.mxu1 %v204_v34  ;;  %v144_v34 = vand.u32 4294901760, %v143_v61 }
  0x34   :  { %854 = vmatprep.subr.mxu0 %v1119_v0  ;;  %881 = vmatprep.subr.mxu1 %v1119_v0 }
  0x35   :  { %855 = vmatpush3.msra.mxu0 %v1257_v60  ;;  %882 = vmatpush3.msra.mxu1 %v211_v41  ;;  %v252_v41 = vsub.f32 %v1312_v51, %v251_v3 }
  0x36   :  { %856 = vmatprep.subr.mxu0 %v1119_v0  ;;  %883 = vmatprep.subr.mxu1 %v1119_v0 }
  0x37   :  { %857 = vmatpush3.msra.mxu0 %v1264_v63  ;;  %884 = vmatpush3.msra.mxu1 %v218_v52  ;;  %v259_v52 = vsub.f32 %v1322_v58, %v258_v19  ;;  %v253_v54 = vand.u32 4294901760, %v252_v41 }
  0x38   :  { %858 = vmatprep.subr.mxu0 %v1119_v0  ;;  %885 = vmatprep.subr.mxu1 %v1119_v0 }
  0x39   :  { %859 = vmatpush3.msra.mxu0 %v1281_v14  ;;  %886 = vmatpush3.msra.mxu1 %v225_v59  ;;  %v260_v59 = vand.u32 4294901760, %v259_v52 }
  0x3a   :  { %860 = vmatprep.subr.mxu0 %v1119_v0  ;;  %887 = vmatprep.subr.mxu1 %v1119_v0 }
  0x3b   :  { %861 = vmatpush3.msra.mxu0 %v1293_v33  ;;  %888 = vmatpush3.msra.mxu1 %v232_v8 }
  0x3c   :  { %889 = vmatprep.subr.mxu1 %v1119_v0  ;;  %900 = vmatprep.subr.mxu0 %v1119_v0 }
  0x3d   :  { %863 = vmatmul.mubr.f32.vlgmr.msra.gmra.mxu0 %v144_v34  ;;  %890 = vmatpush3.msra.mxu1 %v239_v37 }
  0x3e   :  { %901 = vmatpush3.msra.mxu0 %v1168_v15  ;;  %891 = vmatprep.subr.mxu1 %v1119_v0 }
  0x3f   :  { %902 = vmatprep.subr.mxu0 %v1119_v0  ;;  %892 = vmatpush3.msra.mxu1 %v246_v44 }
  0x40   :  { %903 = vmatpush3.msra.mxu0 %v1171_v16  ;;  %893 = vmatprep.subr.mxu1 %v1119_v0 }
  0x41   :  { %904 = vmatprep.subr.mxu0 %v1119_v0  ;;  %894 = vmatpush3.msra.mxu1 %v253_v54 }
  0x42   :  { %905 = vmatpush3.msra.mxu0 %v1176_v18  ;;  %895 = vmatprep.subr.mxu1 %v1119_v0 }
  0x43   :  { %906 = vmatprep.subr.mxu0 %v1119_v0  ;;  %896 = vmatpush3.msra.mxu1 %v260_v59 }
  0x44   :  { %907 = vmatpush3.msra.mxu0 %v1180_v20  ;;  %898 = vmatmul.mubr.f32.vlgmr.msra.gmra.mxu1 %v1266_v1 }
  0x45   :  { %908 = vmatprep.subr.mxu0 %v1119_v0  ;;  %935 = vmatprep.subr.mxu1 %v1119_v0 }
  0x46   :  { %909 = vmatpush3.msra.mxu0 %v1183_v21  ;;  %936 = vmatpush3.msra.mxu1 %v1154_v4 }
  0x47   :  { %910 = vmatprep.subr.mxu0 %v1119_v0  ;;  %937 = vmatprep.subr.mxu1 %v1119_v0 }
  0x48   :  { %911 = vmatpush3.msra.mxu0 %v1197_v30  ;;  %938 = vmatpush3.msra.mxu1 %v1156_v5 }
  0x49   :  { %912 = vmatprep.subr.mxu0 %v1119_v0  ;;  %939 = vmatprep.subr.mxu1 %v1119_v0 }
  0x4a   :  { %913 = vmatpush3.msra.mxu0 %v1210_v35  ;;  %940 = vmatpush3.msra.mxu1 %v1158_v6 }
  0x4b   :  { %914 = vmatprep.subr.mxu0 %v1119_v0  ;;  %941 = vmatprep.subr.mxu1 %v1119_v0 }
  0x4c   :  { %915 = vmatpush3.msra.mxu0 %v1224_v43  ;;  %942 = vmatpush3.msra.mxu1 %v1160_v10 }
  0x4d   :  { %916 = vmatprep.subr.mxu0 %v1119_v0  ;;  %943 = vmatprep.subr.mxu1 %v1119_v0 }
  0x4e   :  { %917 = vmatpush3.msra.mxu0 %v1232_v47  ;;  %944 = vmatpush3.msra.mxu1 %v1162_v11 }
  0x4f   :  { %918 = vmatprep.subr.mxu0 %v1119_v0  ;;  %945 = vmatprep.subr.mxu1 %v1119_v0 }
  0x50   :  { %919 = vmatpush3.msra.mxu0 %v1246_v55  ;;  %946 = vmatpush3.msra.mxu1 %v1164_v12 }
  0x51   :  { %920 = vmatprep.subr.mxu0 %v1119_v0  ;;  %947 = vmatprep.subr.mxu1 %v1119_v0 }
  0x52   :  { %921 = vmatpush3.msra.mxu0 %v1260_v62  ;;  %948 = vmatpush3.msra.mxu1 %v1173_v17 }
  0x53   :  { %922 = vmatprep.subr.mxu0 %v1119_v0  ;;  %949 = vmatprep.subr.mxu1 %v1119_v0 }
  0x54   :  { %923 = vmatpush3.msra.mxu0 %v1274_v9  ;;  %950 = vmatpush3.msra.mxu1 %v1189_v25 }
  0x55   :  { %924 = vmatprep.subr.mxu0 %v1119_v0  ;;  %951 = vmatprep.subr.mxu1 %v1119_v0 }
  0x56   :  { %925 = vmatpush3.msra.mxu0 %v1289_v32  ;;  %952 = vmatpush3.msra.mxu1 %v1193_v28 }
  0x57   :  { %926 = vmatprep.subr.mxu0 %v1119_v0  ;;  %953 = vmatprep.subr.mxu1 %v1119_v0 }
  0x58   :  { %927 = vmatpush3.msra.mxu0 %v1301_v39  ;;  %954 = vmatpush3.msra.mxu1 %v1213_v36 }
  0x59   :  { %928 = vmatprep.subr.mxu0 %v1119_v0  ;;  %955 = vmatprep.subr.mxu1 %v1119_v0 }
  0x5a   :  { %929 = vmatpush3.msra.mxu0 %v1312_v51  ;;  %956 = vmatpush3.msra.mxu1 %v1221_v42 }
  0x5b   :  { %930 = vmatprep.subr.mxu0 %v1119_v0  ;;  %957 = vmatprep.subr.mxu1 %v1119_v0 }
  0x5c   :  { %931 = vmatpush3.msra.mxu0 %v1322_v58  ;;  %932 = vmatprep.mubr.msk.f32.mxu0 %vm1120_vm0, %v1119_v0 }
  0x5d   :  { %958 = vmatpush3.msra.mxu1 %v1238_v49  ;;  %933 = vmatmul.mubr.f32.vlgmr.msra.gmra.mxu0 %v1286_v31 }
  0x5e   :  { %959 = vmatprep.subr.mxu1 %v1119_v0  ;;  %970 = vmatprep.subr.mxu0 %v1119_v0 }
  0x5f   :  { %960 = vmatpush3.msra.mxu1 %v1257_v60  ;;  %971 = vmatpush3.msra.mxu0 %v153_v22 }
  0x60   :  { %961 = vmatprep.subr.mxu1 %v1119_v0  ;;  %972 = vmatprep.subr.mxu0 %v1119_v0 }
  0x61   :  { %962 = vmatpush3.msra.mxu1 %v1264_v63  ;;  %973 = vmatpush3.msra.mxu0 %v160_v23 }
  0x62   :  { %963 = vmatprep.subr.mxu1 %v1119_v0  ;;  %974 = vmatprep.subr.mxu0 %v1119_v0 }
  0x63   :  { %964 = vmatpush3.msra.mxu1 %v1281_v14  ;;  %975 = vmatpush3.msra.mxu0 %v167_v24 }
  0x64   :  { %965 = vmatprep.subr.mxu1 %v1119_v0  ;;  %976 = vmatprep.subr.mxu0 %v1119_v0 }
  0x65   :  { %966 = vmatpush3.msra.mxu1 %v1293_v33  ;;  %967 = vmatprep.mubr.msk.f32.mxu1 %vm1120_vm0, %v1119_v0 }
  0x66   :  { %977 = vmatpush3.msra.mxu0 %v174_v27  ;;  %968 = vmatmul.mubr.f32.vlgmr.msra.gmra.mxu1 %v142_v45 }
  0x67   :  { %978 = vmatprep.subr.mxu0 %v1119_v0  ;;  %1005 = vmatprep.subr.mxu1 %v1119_v0 }
  0x68   :  { %979 = vmatpush3.msra.mxu0 %v181_v29  ;;  %1006 = vmatpush3.msra.mxu1 %v1154_v4  ;;  %v727_v29 = vld [vmem:[%s1523_s1] ss:$0 sm:$0xff] }
  0x69   :  { %980 = vmatprep.subr.mxu0 %v1119_v0  ;;  %1007 = vmatprep.subr.mxu1 %v1119_v0 }
  0x6a   :  { %981 = vmatpush3.msra.mxu0 %v188_v40  ;;  %1008 = vmatpush3.msra.mxu1 %v1156_v5 }
  0x6b   :  { %982 = vmatprep.subr.mxu0 %v1119_v0  ;;  %1009 = vmatprep.subr.mxu1 %v1119_v0 }
  0x6c   :  { %983 = vmatpush3.msra.mxu0 %v195_v46  ;;  %1010 = vmatpush3.msra.mxu1 %v1158_v6 }
  0x6d   :  { %984 = vmatprep.subr.mxu0 %v1119_v0  ;;  %1011 = vmatprep.subr.mxu1 %v1119_v0 }
  0x6e   :  { %985 = vmatpush3.msra.mxu0 %v202_v53  ;;  %1012 = vmatpush3.msra.mxu1 %v1160_v10 }
  0x6f   :  { %986 = vmatprep.subr.mxu0 %v1119_v0  ;;  %1013 = vmatprep.subr.mxu1 %v1119_v0 }
  0x70   :  { %987 = vmatpush3.msra.mxu0 %v209_v56  ;;  %1014 = vmatpush3.msra.mxu1 %v1162_v11 }
  0x71   :  { %988 = vmatprep.subr.mxu0 %v1119_v0  ;;  %1015 = vmatprep.subr.mxu1 %v1119_v0 }
  0x72   :  { %989 = vmatpush3.msra.mxu0 %v216_v7  ;;  %1016 = vmatpush3.msra.mxu1 %v1164_v12 }
  0x73   :  { %990 = vmatprep.subr.mxu0 %v1119_v0  ;;  %1017 = vmatprep.subr.mxu1 %v1119_v0 }
  0x74   :  { %991 = vmatpush3.msra.mxu0 %v223_v26  ;;  %1018 = vmatpush3.msra.mxu1 %v1173_v17 }
  0x75   :  { %992 = vmatprep.subr.mxu0 %v1119_v0  ;;  %1019 = vmatprep.subr.mxu1 %v1119_v0 }
  0x76   :  { %993 = vmatpush3.msra.mxu0 %v230_v38  ;;  %1020 = vmatpush3.msra.mxu1 %v1189_v25 }
  0x77   :  { %994 = vmatprep.subr.mxu0 %v1119_v0  ;;  %1021 = vmatprep.subr.mxu1 %v1119_v0 }
  0x78   :  { %995 = vmatpush3.msra.mxu0 %v237_v50  ;;  %1022 = vmatpush3.msra.mxu1 %v1193_v28 }
  0x79   :  { %996 = vmatprep.subr.mxu0 %v1119_v0  ;;  %1023 = vmatprep.subr.mxu1 %v1119_v0 }
  0x7a   :  { %997 = vmatpush3.msra.mxu0 %v244_v57  ;;  %1024 = vmatpush3.msra.mxu1 %v1213_v36 }
  0x7b   :  { %998 = vmatprep.subr.mxu0 %v1119_v0  ;;  %1025 = vmatprep.subr.mxu1 %v1119_v0 }
  0x7c   :  { %999 = vmatpush3.msra.mxu0 %v251_v3  ;;  %1026 = vmatpush3.msra.mxu1 %v1221_v42 }
  0x7d   :  { %1000 = vmatprep.subr.mxu0 %v1119_v0  ;;  %1027 = vmatprep.subr.mxu1 %v1119_v0 }
  0x7e   :  { %1001 = vmatpush3.msra.mxu0 %v258_v19  ;;  %1002 = vmatprep.mubr.msk.f32.mxu0 %vm1120_vm0, %v1119_v0 }
  0x7f   :  { %1028 = vmatpush3.msra.mxu1 %v1238_v49  ;;  %1003 = vmatmul.mubr.f32.vlgmr.msra.gmra.mxu0 %v1266_v1 }
  0x80   :  { %1029 = vmatprep.subr.mxu1 %v1119_v0  ;;  %1037 = vmatprep.mubr.msk.f32.mxu1 %vm1120_vm0, %v1119_v0 }
  0x81   :  { %1030 = vmatpush3.msra.mxu1 %v1257_v60 }
  0x82   :  { %1031 = vmatprep.subr.mxu1 %v1119_v0 }
  0x83   :  { %1032 = vmatpush3.msra.mxu1 %v1264_v63 }
  0x84   :  { %1033 = vmatprep.subr.mxu1 %v1119_v0 }
  0x85   :  { %1034 = vmatpush3.msra.mxu1 %v1281_v14 }
  0x86   :  { %1035 = vmatprep.subr.mxu1 %v1119_v0 }
  0x87   :  { %1036 = vmatpush3.msra.mxu1 %v1293_v33 }
  0x88   :  { %1038 = vmatmul.mubr.f32.vlgmr.msra.gmra.mxu1 %v1266_v1 }
  0xfd   :  { %v146_v4 = vpop.f32.mrf.mxu0 }
  0xfe   :  { %v147_v17 = vadd.f32 1e-06, %v146_v4 }
  0xff   :  { %v864_v5 = vpop.f32.mrf.mxu0 }
 0x104   :  { %v297_v6 = vpop.f32.mrf.mxu1 }
 0x105   :  { %v298_v20 = vadd.f32 %v297_v6, %v147_v17 }
 0x106   :  { %v899_v10 = vpop.f32.mrf.mxu1 }
 0x11d   :  { %v401_v11 = vpop.f32.mrf.mxu0 }
 0x11e   :  { %v402_v22 = vadd.f32 %v401_v11, %v298_v20 }
 0x11f   :  { %v934_v12 = vpop.f32.mrf.mxu0 }
 0x126   :  { %v490_v15 = vpop.f32.mrf.mxu1 }
 0x127   :  { %v491_v23 = vadd.f32 %v490_v15, %v402_v22 }
 0x128   :  { %v969_v16 = vpop.f32.mrf.mxu1 }
 0x13f   :  { %v609_v18 = vpop.f32.mrf.mxu0 }
 0x140   :  { %v610_v24 = vadd.f32 %v609_v18, %v491_v23 }
 0x141   :  { %v1004_v21 = vpop.f32.mrf.mxu0 }
 0x148   :  { %v696_v0 = vpop.f32.mrf.mxu1 }
 0x149   :  { %v697_v25 = vadd.f32 %v696_v0, %v610_v24 }
 0x14a   :  { %v1039_v27 = vpop.f32.mrf.mxu1 }
 0x14b   :  { %1047 = vrsqrt.f32 %v697_v25 }
 0x158   :  { %v1048_v28 = vpop.eup %1047 }
 0x159   :  { %v701_v30 = vmul.f32 %v1048_v28, %v1234_v48 }
 0x15b   :  { %v709_v35 = vmul.f32 %v727_v29, %v701_v30 }
 0x15d   :  { %710 = vst [vmem:[#allocation7] sm:$0xf] %v709_v35 }
 0x15e   :  { %1100 = shalt.err (!%p1097_p0)
}
 0x15f   :  { %720 = dma.vmem_to_hbm [thread:$0]  %s718_s25, 64, %s1525_s3, [#allocation4]  }
 0x160   :  { %1113 = dma.done.wait [#allocation4], 64  }
 0x161   :  { %1114 = vsyncadd [#allocation4], 4294967232 }
 0x162   :  { %724 = vsyncpa [#allocation3], 1 }
 0x163   :  { %725 = vsyncpa [#allocation6], 1 }
 0x164   :  { %726 = vsyncpa [#allocation4], 1 }

</bundles_post_ra>
